<compile_context>
chip_gen: v7x
topology: tpu7x:2x2x1
jax: 0.10.0
libtpu: 0.0.40
codegen_flags: <defaults>
</compile_context>

<pallas_src>
import functools

import jax
import jax.numpy as jnp
from jax.experimental import pallas as pl
from jax.experimental.pallas import tpu as pltpu

_LANE = 128


def _cdiv(a, b):
    return -(-a // b)


def _round_up(x, m):
    return _cdiv(x, m) * m


def _vmem_limit_bytes():
    """Generation-aware VMEM limit: ~70% of per-core VMEM, capped at 64 MiB."""
    try:
        cap = int(pltpu.get_tpu_info().vmem_capacity_bytes)
    except Exception:  # conservative fallback if the query is unavailable
        cap = 64 * 1024 * 1024
    return min(int(cap * 0.7), 64 * 1024 * 1024)


# ---------------------------------------------------------------------------
# Kernels
# ---------------------------------------------------------------------------
def _matmul_bias_kernel(x_ref, w_ref, b_ref, o_ref):
    # One MXU push per tile, f32 accumulation, one (free) VALU bias add.
    acc = jnp.dot(x_ref[...], w_ref[...], preferred_element_type=jnp.float32)
    o_ref[...] = (acc + b_ref[...]).astype(o_ref.dtype)


def _matmul_bias_ktiled_kernel(x_ref, w_ref, b_ref, o_ref, acc_ref):
    # Large-K path: K reduction grid axis (innermost, "arbitrary") with an
    # f32 VMEM accumulator; init at k==0, finalize at k==last.
    k = pl.program_id(2)

    @pl.when(k == 0)
    def _init():
        acc_ref[...] = jnp.zeros_like(acc_ref)

    acc_ref[...] += jnp.dot(x_ref[...], w_ref[...],
                            preferred_element_type=jnp.float32)

    @pl.when(k == pl.num_programs(2) - 1)
    def _finalize():
        o_ref[...] = (acc_ref[...] + b_ref[...]).astype(o_ref.dtype)


# ---------------------------------------------------------------------------
# Tile planning
# ---------------------------------------------------------------------------
def _plan_tiles(B, K, N, itemsize, out_itemsize, budget):
    """Pick (block_b, b_tiles, block_n, n_tiles, block_k, k_tiles) under budget."""
    row_mult = max(8, 32 // itemsize)  # sublane packing (8 for f32, 16 for bf16)

    # --- K: fully resident unless decently sized M/N tiles can't fit ---
    tgt_bb = min(256, _round_up(B, row_mult))
    tgt_bn = min(256, _round_up(N, _LANE))
    full_k_need = (2 * (tgt_bb + tgt_bn) * K * itemsize
                   + 2 * tgt_bb * tgt_bn * out_itemsize)
    if full_k_need <= budget:
        block_k, k_tiles = K, 1
    else:
        block_k = min(_round_up(K, 512), 2048)
        while (block_k > 512
               and (2 * (tgt_bb + tgt_bn) * block_k * itemsize
                    + 2 * tgt_bb * tgt_bn * out_itemsize
                    + tgt_bb * tgt_bn * 4) > budget):
            block_k //= 2
        k_tiles = _cdiv(K, block_k)

    # --- N: weights fully resident per K-block when they fit, else tile ---
    w_budget = budget // 3
    if N <= _LANE or 2 * block_k * _round_up(N, _LANE) * itemsize <= w_budget:
        block_n, n_tiles = N, 1       # full-dim block: no padding needed
    else:
        bn = max(_LANE, (w_budget // (2 * block_k * itemsize)) // _LANE * _LANE)
        block_n = min(1024, bn)
        n_tiles = _cdiv(N, block_n)

    # --- B: spend the remaining budget on the batch tile ---
    eff_bn = min(block_n, N)
    w_bytes = 2 * block_k * eff_bn * itemsize + 2 * eff_bn * 4
    per_row = 2 * block_k * itemsize + 2 * eff_bn * out_itemsize
    if k_tiles > 1:
        per_row += eff_bn * 4         # f32 accumulator scratch (single-buffered)
    avail = max(budget - w_bytes, per_row * row_mult)
    block_b = max(row_mult, min(1024, avail // per_row) // row_mult * row_mult)
    if block_b >= B:
        block_b = B                   # full-dim block: no masking needed
    # v7x megacore: expose >= 2 blocks on the parallel axes so both TCs work.
    if n_tiles == 1 and block_b == B and B >= 2 * row_mult:
        block_b = _round_up(_cdiv(B, 2), row_mult)
    b_tiles = _cdiv(B, block_b)
    return block_b, b_tiles, block_n, n_tiles, block_k, k_tiles


# ---------------------------------------------------------------------------
# Wrapper
# ---------------------------------------------------------------------------
@functools.partial(jax.jit, static_argnames=("compute_dtype",))
def fused_linear_combination(x, w, bias=None, *, compute_dtype=None):
    """out = x @ w (+ bias) as a single fused Pallas TPU matmul.

    x   : [B, K]  (K = sum of per-input dims; pre-concatenated activations)
    w   : [K, N]  (pre-concatenated, pre-transposed vs. torch Linear.weight)
    bias: [N] or None (None => no bias is added)
    """
    B, K = x.shape
    Kw, N = w.shape
    assert Kw == K, (K, Kw)

    out_dtype = jnp.result_type(x.dtype, w.dtype)
    if compute_dtype is not None:
        cd = jnp.dtype(compute_dtype)
        # TODO(synk): cache the compute_dtype-cast weights at module init when
        # bf16 compute is enabled, instead of re-casting per call.
        x = x.astype(cd)
        w = w.astype(cd)
    itemsize = jnp.dtype(x.dtype).itemsize
    out_itemsize = jnp.dtype(out_dtype).itemsize

    if bias is None:
        bias = jnp.zeros((N,), dtype=jnp.float32)
    bias2d = bias.astype(jnp.float32).reshape(1, N)

    vmem_limit = _vmem_limit_bytes()
    budget = vmem_limit * 3 // 4      # headroom for compiler-internal scratch

    block_b, b_tiles, block_n, n_tiles, block_k, k_tiles = _plan_tiles(
        B, K, N, itemsize, out_itemsize, budget)

    # Only the large-K path needs padding (zero K-padding keeps the contraction
    # exact). Batch / N ragged edges use partial edge blocks: garbage rows/cols
    # never enter the contraction and are never written back.
    if k_tiles > 1:
        k_pad = k_tiles * block_k
        if k_pad != K:
            x = jnp.pad(x, ((0, 0), (0, k_pad - K)))
            w = jnp.pad(w, ((0, k_pad - K), (0, 0)))

    # Grid order: the larger operand's index_map depends only on the OUTER axis
    # so it is DMA'd from HBM only once (matters when both axes have >1 tile).
    batch_outer = B * K >= K * N
    if k_tiles == 1:
        kernel = _matmul_bias_kernel
        scratch_shapes = ()
        dims = ("parallel", "parallel")
        if batch_outer:
            grid = (b_tiles, n_tiles)
            x_map = lambda i, j: (i, 0)
            w_map = lambda i, j: (0, j)
            b_map = lambda i, j: (0, j)
            o_map = lambda i, j: (i, j)
        else:
            grid = (n_tiles, b_tiles)
            x_map = lambda j, i: (i, 0)
            w_map = lambda j, i: (0, j)
            b_map = lambda j, i: (0, j)
            o_map = lambda j, i: (i, j)
    else:
        kernel = _matmul_bias_ktiled_kernel
        scratch_shapes = (pltpu.VMEM((block_b, block_n), jnp.float32),)
        dims = ("parallel", "parallel", "arbitrary")
        if batch_outer:
            grid = (b_tiles, n_tiles, k_tiles)
            x_map = lambda i, j, k: (i, k)
            w_map = lambda i, j, k: (k, j)
            b_map = lambda i, j, k: (0, j)
            o_map = lambda i, j, k: (i, j)
        else:
            grid = (n_tiles, b_tiles, k_tiles)
            x_map = lambda j, i, k: (i, k)
            w_map = lambda j, i, k: (k, j)
            b_map = lambda j, i, k: (0, j)
            o_map = lambda j, i, k: (i, j)

    cost = pl.CostEstimate(
        flops=2 * B * K * N,
        transcendentals=0,
        bytes_accessed=(B * K + K * N) * itemsize + B * N * out_itemsize + N * 4,
    )

    return pl.pallas_call(
        kernel,
        out_shape=jax.ShapeDtypeStruct((B, N), out_dtype),
        grid_spec=pltpu.PrefetchScalarGridSpec(
            num_scalar_prefetch=0,
            grid=grid,
            in_specs=[
                pl.BlockSpec((block_b, block_k), x_map),   # activations
                pl.BlockSpec((block_k, block_n), w_map),   # fused weights
                pl.BlockSpec((1, block_n), b_map),         # bias row
            ],
            out_specs=pl.BlockSpec((block_b, block_n), o_map),
            scratch_shapes=scratch_shapes,
        ),
        compiler_params=pltpu.CompilerParams(
            dimension_semantics=dims,
            vmem_limit_bytes=vmem_limit,
        ),
        cost_estimate=cost,
    )(x, w, bias2d)


# ---------------------------------------------------------------------------
# Module mirror
# ---------------------------------------------------------------------------
class LinearCombinationJax:
    """JAX mirror of gembed's LinearCombination (deterministic synthetic init)."""

    def __init__(self, *dims, include_bias=False, key=None):
        dims_in = dims[:-1]
        dim_out = dims[-1]
        if key is None:
            key = jax.random.PRNGKey(0)
        self.dims_in = tuple(int(d) for d in dims_in)
        self.dim_out = int(dim_out)
        self.weights = []
        for d_in in self.dims_in:
            key, sub = jax.random.split(key)
            bound = 1.0 / float(d_in) ** 0.5   # torch.nn.Linear default init range
            self.weights.append(jax.random.uniform(
                sub, (d_in, self.dim_out), minval=-bound, maxval=bound,
                dtype=jnp.float32))
        self.include_bias = include_bias
        self.bias = jnp.zeros((self.dim_out,), dtype=jnp.float32)
        # Weight-side prep hoisted out of the per-call path: build the fused
        # [sum(d_i), d_out] weight matrix ONCE here (perf review item 1).
        self._w_cat = jnp.concatenate(self.weights, axis=0)

    def __call__(self, *inputs, compute_dtype=None):
        inputs = inputs[:-1]               # reference module drops the last input
        n = len(inputs)
        w_cat = self._w_cat
        if n < len(self.weights):          # reference only uses the first n layers
            w_cat = w_cat[: sum(self.dims_in[:n])]
        x_cat = inputs[0] if n == 1 else jnp.concatenate(inputs, axis=1)
        # Gate the bias add on include_bias (matches the reference even if a
        # nonzero bias tensor exists while include_bias=False).
        bias = self.bias if self.include_bias else None
        return fused_linear_combination(x_cat, w_cat, bias,
                                        compute_dtype=compute_dtype)

    def reference(self, *inputs):
        inputs = inputs[:-1]
        res = jnp.dot(inputs[0], self.weights[0], precision="highest")
        for i in range(1, len(inputs)):
            res = res + jnp.dot(inputs[i], self.weights[i], precision="highest")
        if self.include_bias:
            res = res + self.bias
        return res


if __name__ == "__main__":
    key = jax.random.PRNGKey(0)
    keys = jax.random.split(key, 10)

    # --- module 1: dims (32, 16) -> 8, with bias ---
    m1 = LinearCombinationJax(32, 16, 8, include_bias=True, key=keys[0])

    B = 16
    x1 = jax.random.normal(keys[1], (B, 32), dtype=jnp.float32)
    x2 = jax.random.normal(keys[2], (B, 16), dtype=jnp.float32)
    x_drop = jax.random.normal(keys[3], (B, 8), dtype=jnp.float32)   # discarded
    out = jax.block_until_ready(m1(x1, x2, x_drop))
    ref = m1.reference(x1, x2, x_drop)
    assert out.shape == ref.shape == (B, 8)
    assert jnp.allclose(out, ref, atol=2e-5, rtol=2e-5)

    # --- ragged batch (not a multiple of 8) exercises full-dim blocks ---
    B2 = 13
    y1 = jax.random.normal(keys[4], (B2, 32), dtype=jnp.float32)
    y2 = jax.random.normal(keys[5], (B2, 16), dtype=jnp.float32)
    y_drop = jax.random.normal(keys[6], (B2, 8), dtype=jnp.float32)  # discarded
    out2 = jax.block_until_ready(m1(y1, y2, y_drop))
    ref2 = m1.reference(y1, y2, y_drop)
    assert out2.shape == ref2.shape == (B2, 8)
    assert jnp.allclose(out2, ref2, atol=2e-5, rtol=2e-5)

    # --- module 2: no bias, lane-dense d_out, partial batch edge block ---
    m2 = LinearCombinationJax(64, 96, 128, include_bias=False, key=keys[7])
    B3 = 200
    z1 = jax.random.normal(keys[8], (B3, 64), dtype=jnp.float32)
    z2 = jax.random.normal(keys[9], (B3, 96), dtype=jnp.float32)
    z_drop = jnp.zeros((B3, 4), dtype=jnp.float32)                   # discarded
    out3 = jax.block_until_ready(m2(z1, z2, z_drop))
    ref3 = m2.reference(z1, z2, z_drop)
    assert out3.shape == ref3.shape == (B3, 128)
    assert jnp.allclose(out3, ref3, atol=2e-5, rtol=2e-5)

    print("KERNEL_OK")
</pallas_src>

<mosaic_0001>
module attributes {stable_mosaic.version = 11 : i64} {
  func.func @_matmul_bias_kernel(%arg0: i32, %arg1: i32, %arg2: memref<8x48xf32, #tpu.memory_space<vmem>>, %arg3: memref<48x8xf32, #tpu.memory_space<vmem>>, %arg4: memref<1x8xf32, #tpu.memory_space<vmem>>, %arg5: memref<8x8xf32, #tpu.memory_space<vmem>>) attributes {dimension_semantics = [#tpu.dimension_semantics<parallel>, #tpu.dimension_semantics<parallel>], iteration_bounds = array<i64: 2, 1>, scalar_prefetch = 0 : i64, scratch_operands = 0 : i64, tpu.core_type = #tpu.core_type<tc>, window_params = [{transform_indices = @transform_0, window_bounds = array<i64: 8, 48>}, {transform_indices = @transform_1, window_bounds = array<i64: 48, 8>}, {transform_indices = @transform_2, window_bounds = array<i64: 1, 8>}, {transform_indices = @transform_3, window_bounds = array<i64: 8, 8>}]} {
    %c0 = arith.constant 0 : index
    %c0_0 = arith.constant 0 : index
    %0 = vector.load %arg2[%c0, %c0_0] : memref<8x48xf32, #tpu.memory_space<vmem>>, vector<8x48xf32>
    %c0_1 = arith.constant 0 : index
    %c0_2 = arith.constant 0 : index
    %1 = vector.load %arg3[%c0_1, %c0_2] : memref<48x8xf32, #tpu.memory_space<vmem>>, vector<48x8xf32>
    %cst = arith.constant dense<0.000000e+00> : vector<8x8xf32>
    %2 = tpu.matmul %0, %1, %cst {dimension_numbers = #tpu.dot_dimension_numbers<[1], [0], [0], [1], [0, 0, 1, 1], [], []>} : vector<8x48xf32>, vector<48x8xf32>, vector<8x8xf32> -> vector<8x8xf32>
    %c0_3 = arith.constant 0 : index
    %c0_4 = arith.constant 0 : index
    %3 = vector.load %arg4[%c0_3, %c0_4] : memref<1x8xf32, #tpu.memory_space<vmem>>, vector<1x8xf32>
    %4 = vector.broadcast %3 : vector<1x8xf32> to vector<8x8xf32>
    %5 = arith.addf %2, %4 : vector<8x8xf32>
    %c0_5 = arith.constant 0 : index
    %c0_6 = arith.constant 0 : index
    %6 = vector.load %arg5[%c0_5, %c0_6] : memref<8x8xf32, #tpu.memory_space<vmem>>, vector<8x8xf32>
    tpu.vector_store %arg5[%c0_5, %c0_6], %5 {strides = array<i32>} : memref<8x8xf32, #tpu.memory_space<vmem>>, vector<8x8xf32>,
    return
  }
  func.func @transform_0(%arg0: i32, %arg1: i32) -> (i32, i32) {
    %c0_i32 = arith.constant 0 : i32
    %c0_i32_0 = arith.constant 0 : i32
    return %arg0, %c0_i32 : i32, i32
  }
  func.func @transform_1(%arg0: i32, %arg1: i32) -> (i32, i32) {
    %c0_i32 = arith.constant 0 : i32
    %c0_i32_0 = arith.constant 0 : i32
    return %c0_i32, %arg1 : i32, i32
  }
  func.func @transform_2(%arg0: i32, %arg1: i32) -> (i32, i32) {
    %c0_i32 = arith.constant 0 : i32
    %c0_i32_0 = arith.constant 0 : i32
    return %c0_i32, %arg1 : i32, i32
  }
  func.func @transform_3(%arg0: i32, %arg1: i32) -> (i32, i32) {
    %c0_i32 = arith.constant 0 : i32
    return %arg0, %arg1 : i32, i32
  }
}

</mosaic_0001>

<bundles_post_ra>
// kernel: fused_linear_combination.1
= control target key start
LH: loop header
LB: loop body
LE: loop exit
PB: predicated region body
PF: predicated region fallthrough
CT: control target
= control target key end

     0   :  { %s524_s12 = smov 0   ;;  %s526_s13 = smov 0   ;;  %s578_s0 = inlined_call_operand.vmem [shape: f32[16,48], index: 0, kind: input, shape index: {}]   ;;  %s579_s1 = inlined_call_operand.vmem [shape: f32[48,8], index: 1, kind: input, shape index: {}]   ;;  %s580_s2 = inlined_call_operand.vmem [shape: f32[1,8], index: 2, kind: input, shape index: {}]   ;;  %s581_s3 = inlined_call_operand.vmem [shape: f32[16,8], index: 3, kind: output, shape index: {}]  }
   0x1   :  { %s528_s14 = smov 0  }
   0x2 LB: > { %s25_s15 = sadd.s32 1, %s495_s13  ;;  %p412_p0 = scmp.ge.s32.totalorder %s499_s14, 1  ;;  %s499_s14 = sphi %s528_s14, %s13_s14   ;;  %s495_s13 = sphi %s526_s13, %s583_s13   ;;  %s491_s12 = sphi %s524_s12, %s582_s12  }
   0x3   : > { %p27_p1 = scmp.ge.s32.totalorder %s25_s15, 2  ;;  %p167_p2 = scmp.lt.s32.totalorder %s499_s14, 3 }
   0x5   : > { %s585_s15 = smov (%p27_p1, %s25_s15), 0  ;;  %p168_p3 = pnand %p412_p0, %p167_p2 }
   0x6   : > { %v218_v0 = vld [vmem:[%s579_s1] sm:$0xff] (!%p168_p3)  ;;  %v219_v1 = vld [vmem:[%s579_s1 + $0x8] sm:$0xff] (!%p168_p3)  ;;  %v220_v2 = vld [vmem:[%s579_s1 + $0x10] sm:$0xff] (!%p168_p3)  ;;  %v501_v3 = vmov (!%p168_p3), 0.0|0.0   ;;  %vm502_vm0 = vmmov (!%p168_p3), 0   ;;  %v503_v6 = vmov (!%p168_p3), 0.0  }
   0x7   : > { %171 = sbr.rel (%p168_p3) target bundleno = 235 (0xeb), region = 32  ;;  %441 = vmatprep.subr.bf16.mxu0 (!%p168_p3), %v501_v3  ;;  %v442_v4 = vpack.c.bf16 (!%p168_p3), %v219_v1, %v218_v0  ;;  %v221_v5 = vld [vmem:[%s579_s1 + $0x18] sm:$0xff] (!%p168_p3)  ;;  %438 = vmatprep.mubr.msk.f32.mxu0 (!%p168_p3), %vm502_vm0, %v503_v6  ;;  %p199_p4 = scmp.lt.s32.totalorder (!%p168_p3), %s491_s12, 1  ;;  %v222_v8 = vld [vmem:[%s579_s1 + $0x20] sm:$0xff] (!%p168_p3)  ;;  %v223_v9 = vld [vmem:[%s579_s1 + $0x28] sm:$0xff] (!%p168_p3)  ;;  %vm231_vm1 = vcmask (!%p168_p3), 392192  }
   0x8   : > { %v445_v7 = vpack.c.bf16 (!%p168_p3), %v221_v5, %v220_v2  ;;  %v448_v10 = vpack.c.bf16 (!%p168_p3), %v223_v9, %v222_v8  ;;  %v415_v12 = vld [vmem:[%s580_s2] ss:$0 sm:$0xff] (!%p168_p3)  ;;  %vm305_vm2 = vcmask (!%p168_p3), 64512  }
   0x9   : > { %443 = vmatpush3.bf16.msra.mxu0 (!%p168_p3), %v442_v4 }
   0xa   : > { %444 = vmatprep.subr.bf16.mxu0 (!%p168_p3), %v501_v3 }
   0xd   : > { %446 = vmatpush3.bf16.msra.mxu0 (!%p168_p3), %v445_v7 }
   0xe   : > { %s587_s12 = smov (!%p199_p4, %s491_s12), 1  ;;  %447 = vmatprep.subr.bf16.mxu0 %v501_v3 }
   0xf   : > { %s413_s28 = sshll.u32 %s587_s12, 3 }
  0x10   : > { %s202_s4 = scalar_lea.vmem %s578_s0, %s413_s28  ;;  %s216_s9 = scalar_lea.vmem %s581_s3, %s413_s28 }
  0x11   : > { %449 = vmatpush3.bf16.msra.mxu0 %v448_v10  ;;  %v217_v11 = vld [vmem:[%s202_s4] sm:$0xff] }
  0x14   : > { %439 = vmatmul.mubr.msk.f32.vlgmr.msra.gmra.mrb[0].mxu0 %vm231_vm1, %v217_v11 }
  0xe7   : > { %v301_v13 = vpop.f32.mrb[0].mxu0 }
  0xe8   : > { %v302_v14 = vadd.f32 %v415_v12, %v301_v13  ;;  %v440_v15 = vpop.f32.mrb[1].mxu0 }
  0xea   : > { %306 = vst.msk [vmem:[%s216_s9] sm:$0xff] %vm305_vm2, %v302_v14 }
  0xeb PF: > { %s13_s14 = sadd.s32 1, %s499_s14   ;;  %s582_s12 = smov %s495_s13 }
  0xec   : > { %p10_p5 = scmp.ge.s32.totalorder %s13_s14, 4   ;;  %s583_s13 = smov %s585_s15 }
  0xee   :  { %12 = sbr.rel (!%p10_p5) target bundleno = 2 (0x2), region = 68 }

</bundles_post_ra>
